<compile_context>
chip_gen: v5e
topology: v5e:2x2
jax: 0.10.0
libtpu: 0.0.40
codegen_flags: <defaults>
</compile_context>

<pallas_src>
import jax
import jax.numpy as jnp
from jax.experimental import pallas as pl
from jax.experimental.pallas import tpu as pltpu


def _round_up(n, m):
    return ((n + m - 1) // m) * m


def _vmem_capacity_bytes():
    try:
        return int(pltpu.get_tpu_info().vmem_capacity_bytes)
    except Exception:
        return 64 * 2**20  # conservative fallback: v7x per-TC VMEM


def attention_block_kernel(x_ref, w1_ref, b1_ref, w2_ref, b2_ref, o_ref):
    x = x_ref[...]

    # Linear(F -> H) + ReLU  (MXU matmul, f32 accumulation; VPU max).
    h = jnp.dot(x.astype(w1_ref.dtype), w1_ref[...],
                preferred_element_type=jnp.float32)
    h = jnp.maximum(h + b1_ref[...].astype(jnp.float32), 0.0)

    # Linear(H -> F) + Sigmoid  (MXU matmul; EUP exp via jax.nn.sigmoid).
    logits = jnp.dot(h.astype(w2_ref.dtype), w2_ref[...],
                     preferred_element_type=jnp.float32)
    attn = jax.nn.sigmoid(logits + b2_ref[...].astype(jnp.float32))

    # Epilogue: attention-weighted features.
    if o_ref.dtype == jnp.float32:
        # f32 path (exact vs. an f32 reference; also the only VPU dtype on v5e).
        o_ref[...] = x.astype(jnp.float32) * attn
    else:
        # Narrow-dtype path: avoids an f32 copy of the x tile (bf16 VALU on v6e/v7x).
        o_ref[...] = (x * attn.astype(x.dtype)).astype(o_ref.dtype)


def attention_block(x, w1, b1, w2, b2, *, block_b=None, compute_dtype=None):
    """x: (B, F); w1: (F, H); b1: (1, H); w2: (H, F); b2: (1, F);  H = F // 2."""
    B, F = x.shape
    H = w1.shape[1]
    assert w1.shape == (F, H) and w2.shape == (H, F)
    assert b1.shape == (1, H) and b2.shape == (1, F)

    out_dtype = x.dtype
    if compute_dtype is not None:
        # Optional: bf16 MXU operands (accuracy-budget permitting); accumulation
        # stays f32 inside the kernel via preferred_element_type.
        w1 = w1.astype(compute_dtype)
        w2 = w2.astype(compute_dtype)

    x_isz = jnp.dtype(x.dtype).itemsize
    w_isz = jnp.dtype(w1.dtype).itemsize
    sublane = 8 if x_isz >= 4 else (16 if x_isz == 2 else 32)

    # ---- Pad ONLY the hidden dim of the (batch-reused) weights/biases to 128 lanes.
    # Zero padding is exact. x and the output keep full F: the last block dim equals
    # the full array dim, which satisfies the (8,128) BlockSpec rule, and we avoid
    # two extra HBM passes (pad + slice) over the activation.
    Hp = _round_up(H, 128)
    if Hp != H:
        w1 = jnp.pad(w1, ((0, 0), (0, Hp - H)))
        b1 = jnp.pad(b1, ((0, 0), (0, Hp - H)))
        w2 = jnp.pad(w2, ((0, Hp - H), (0, 0)))

    # ---- Per-generation VMEM budget (85% of per-TC capacity: ~56 MiB v7x, ~110 MiB v5e/v6e).
    vmem_budget = int(0.85 * _vmem_capacity_bytes())

    resident = 2 * F * Hp * w_isz + (Hp + F) * w_isz  # w1, w2, b1, b2 (constant index)
    if resident > int(0.7 * vmem_budget):
        # TODO(synk): tile the F/H contraction (extra 'arbitrary' grid axis + f32
        # accumulator scratch) for feature dims whose weights don't fit in VMEM.
        raise ValueError(
            f"resident attention weights ({resident} B) exceed the VMEM budget "
            f"({vmem_budget} B); contraction tiling not implemented")

    # ---- Batch tile: large tiles for the HBM-bound small-F regime, shrunk until the
    # full working set fits the per-TC VMEM budget. The final tile may be partial.
    if block_b is None:
        block_b = 1024 if F <= 1024 else 256
    TB = max(sublane, min(_round_up(block_b, sublane), _round_up(B, sublane)))

    def vmem_needed(tb, n_x_buf):
        return (resident
                + n_x_buf * tb * F * x_isz          # x tiles (multi-buffered)
                + 2 * tb * F * x_isz                # out tiles (double-buffered)
                + tb * (Hp + 2 * F) * 4)            # f32 intermediates (h, attn, product)

    num_steps = pl.cdiv(B, TB)
    x_bufs = 3 if num_steps >= 3 else 2             # deeper x buffering hides exposed DMA
    while TB > sublane and vmem_needed(TB, x_bufs) > vmem_budget:
        TB = max(sublane, _round_up(TB // 2, sublane))
        num_steps = pl.cdiv(B, TB)
        x_bufs = 3 if num_steps >= 3 else 2

    grid = (num_steps,)                              # no wrapper-side batch padding

    if x_bufs == 3:
        x_spec = pl.BlockSpec((TB, F), lambda i: (i, 0), pipeline_mode=pl.Buffered(3))
    else:
        x_spec = pl.BlockSpec((TB, F), lambda i: (i, 0))

    vmem_limit = int(min(vmem_budget, max(2 * vmem_needed(TB, x_bufs), 4 * 2**20)))

    cost = pl.CostEstimate(
        flops=4 * B * F * H,                         # two matmuls
        transcendentals=B * F,                       # sigmoid exp
        bytes_accessed=2 * B * F * x_isz + 2 * F * Hp * w_isz,
    )

    out = pl.pallas_call(
        attention_block_kernel,
        out_shape=jax.ShapeDtypeStruct((B, F), out_dtype),
        grid_spec=pltpu.PrefetchScalarGridSpec(
            num_scalar_prefetch=0,
            grid=grid,
            in_specs=[
                x_spec,                                       # x: streamed over batch
                pl.BlockSpec((F, Hp), lambda i: (0, 0)),      # w1: VMEM-resident
                pl.BlockSpec((1, Hp), lambda i: (0, 0)),      # b1
                pl.BlockSpec((Hp, F), lambda i: (0, 0)),      # w2: VMEM-resident
                pl.BlockSpec((1, F), lambda i: (0, 0)),       # b2
            ],
            out_specs=pl.BlockSpec((TB, F), lambda i: (i, 0)),
        ),
        compiler_params=pltpu.CompilerParams(
            dimension_semantics=("parallel",),   # megacore sharding on v7x (2 TCs)
            vmem_limit_bytes=vmem_limit,
        ),
        cost_estimate=cost,
    )(x, w1, b1, w2, b2)

    return out


if __name__ == "__main__":
    # Small shapes consistent with the module: (batch, in_features)
    B = 8
    F = 32
    H = F // 2  # hidden size of the attention MLP

    key = jax.random.PRNGKey(0)
    kx, kw1, kb1, kw2, kb2 = jax.random.split(key, 5)

    x = jax.random.normal(kx, (B, F), dtype=jnp.float32)

    # Deterministic synthetic parameters (shapes mirror transposed nn.Linear weights)
    w1 = jax.random.normal(kw1, (F, H), dtype=jnp.float32) * 0.1
    b1 = jax.random.normal(kb1, (1, H), dtype=jnp.float32) * 0.1
    w2 = jax.random.normal(kw2, (H, F), dtype=jnp.float32) * 0.1
    b2 = jax.random.normal(kb2, (1, F), dtype=jnp.float32) * 0.1

    def ref_fn(xv, a1, c1, a2, c2):
        h = jnp.maximum(xv @ a1 + c1, 0.0)
        return xv * jax.nn.sigmoid(h @ a2 + c2)

    # Test 1: single grid step.
    out = jax.block_until_ready(attention_block(x, w1, b1, w2, b2))
    ref = ref_fn(x, w1, b1, w2, b2)
    assert out.shape == ref.shape, "shape mismatch vs reference"
    assert jnp.allclose(out, ref, atol=1e-5, rtol=1e-5), "mismatch vs reference"

    # Test 2: multi-step grid with a partial final tile and 3-deep x buffering.
    B2 = 200
    x2 = jax.random.normal(jax.random.PRNGKey(1), (B2, F), dtype=jnp.float32)
    out2 = jax.block_until_ready(attention_block(x2, w1, b1, w2, b2, block_b=64))
    ref2 = ref_fn(x2, w1, b1, w2, b2)
    assert out2.shape == ref2.shape, "shape mismatch vs reference (partial tile)"
    assert jnp.allclose(out2, ref2, atol=1e-5, rtol=1e-5), "mismatch vs reference (partial tile)"

    print("KERNEL_OK")
</pallas_src>

<mosaic_0001>
module attributes {stable_mosaic.version = 11 : i64} {
  func.func @attention_block_kernel(%arg0: i32, %arg1: memref<8x32xf32, #tpu.memory_space<vmem>>, %arg2: memref<32x128xf32, #tpu.memory_space<vmem>>, %arg3: memref<1x128xf32, #tpu.memory_space<vmem>>, %arg4: memref<128x32xf32, #tpu.memory_space<vmem>>, %arg5: memref<1x32xf32, #tpu.memory_space<vmem>>, %arg6: memref<8x32xf32, #tpu.memory_space<vmem>>) attributes {dimension_semantics = [#tpu.dimension_semantics<parallel>], iteration_bounds = array<i64: 1>, scalar_prefetch = 0 : i64, scratch_operands = 0 : i64, tpu.core_type = #tpu.core_type<tc>, window_params = [{transform_indices = @transform_0, window_bounds = array<i64: 8, 32>}, {pipeline_mode = #tpu.pipeline_mode<synchronous>, transform_indices = @transform_1, window_bounds = array<i64: 32, 128>}, {pipeline_mode = #tpu.pipeline_mode<synchronous>, transform_indices = @transform_2, window_bounds = array<i64: 1, 128>}, {pipeline_mode = #tpu.pipeline_mode<synchronous>, transform_indices = @transform_3, window_bounds = array<i64: 128, 32>}, {pipeline_mode = #tpu.pipeline_mode<synchronous>, transform_indices = @transform_4, window_bounds = array<i64: 1, 32>}, {transform_indices = @transform_5, window_bounds = array<i64: 8, 32>}]} {
    %c0 = arith.constant 0 : index
    %c0_0 = arith.constant 0 : index
    %0 = vector.load %arg1[%c0, %c0_0] : memref<8x32xf32, #tpu.memory_space<vmem>>, vector<8x32xf32>
    %c0_1 = arith.constant 0 : index
    %c0_2 = arith.constant 0 : index
    %1 = vector.load %arg2[%c0_1, %c0_2] : memref<32x128xf32, #tpu.memory_space<vmem>>, vector<32x128xf32>
    %cst = arith.constant dense<0.000000e+00> : vector<8x128xf32>
    %2 = tpu.matmul %0, %1, %cst {dimension_numbers = #tpu.dot_dimension_numbers<[1], [0], [0], [1], [0, 0, 1, 1], [], []>} : vector<8x32xf32>, vector<32x128xf32>, vector<8x128xf32> -> vector<8x128xf32>
    %c0_3 = arith.constant 0 : index
    %c0_4 = arith.constant 0 : index
    %3 = vector.load %arg3[%c0_3, %c0_4] : memref<1x128xf32, #tpu.memory_space<vmem>>, vector<1x128xf32>
    %4 = vector.broadcast %3 : vector<1x128xf32> to vector<8x128xf32>
    %5 = arith.addf %2, %4 : vector<8x128xf32>
    %cst_5 = arith.constant 0.000000e+00 : f32
    %6 = vector.broadcast %cst_5 : f32 to vector<8x128xf32>
    %7 = arith.maximumf %5, %6 : vector<8x128xf32>
    %c0_6 = arith.constant 0 : index
    %c0_7 = arith.constant 0 : index
    %8 = vector.load %arg4[%c0_6, %c0_7] : memref<128x32xf32, #tpu.memory_space<vmem>>, vector<128x32xf32>
    %cst_8 = arith.constant dense<0.000000e+00> : vector<8x32xf32>
    %9 = tpu.matmul %7, %8, %cst_8 {dimension_numbers = #tpu.dot_dimension_numbers<[1], [0], [0], [1], [0, 0, 1, 1], [], []>} : vector<8x128xf32>, vector<128x32xf32>, vector<8x32xf32> -> vector<8x32xf32>
    %c0_9 = arith.constant 0 : index
    %c0_10 = arith.constant 0 : index
    %10 = vector.load %arg5[%c0_9, %c0_10] : memref<1x32xf32, #tpu.memory_space<vmem>>, vector<1x32xf32>
    %11 = vector.broadcast %10 : vector<1x32xf32> to vector<8x32xf32>
    %12 = arith.addf %9, %11 : vector<8x32xf32>
    %13 = arith.negf %12 : vector<8x32xf32>
    %14 = math.exp %13 : vector<8x32xf32>
    %cst_11 = arith.constant 1.000000e+00 : f32
    %15 = vector.broadcast %cst_11 : f32 to vector<8x32xf32>
    %16 = arith.addf %15, %14 : vector<8x32xf32>
    %17 = arith.divf %15, %16 : vector<8x32xf32>
    %18 = arith.mulf %0, %17 : vector<8x32xf32>
    %c0_12 = arith.constant 0 : index
    %c0_13 = arith.constant 0 : index
    %19 = vector.load %arg6[%c0_12, %c0_13] : memref<8x32xf32, #tpu.memory_space<vmem>>, vector<8x32xf32>
    tpu.vector_store %arg6[%c0_12, %c0_13], %18 {strides = array<i32>} : memref<8x32xf32, #tpu.memory_space<vmem>>, vector<8x32xf32>,
    return
  }
  func.func @transform_0(%arg0: i32) -> (i32, i32) {
    %c0_i32 = arith.constant 0 : i32
    %c0_i32_0 = arith.constant 0 : i32
    return %arg0, %c0_i32 : i32, i32
  }
  func.func @transform_1(%arg0: i32) -> (i32, i32) {
    %c0_i32 = arith.constant 0 : i32
    %c0_i32_0 = arith.constant 0 : i32
    %c0_i32_1 = arith.constant 0 : i32
    return %c0_i32, %c0_i32_0 : i32, i32
  }
  func.func @transform_2(%arg0: i32) -> (i32, i32) {
    %c0_i32 = arith.constant 0 : i32
    %c0_i32_0 = arith.constant 0 : i32
    %c0_i32_1 = arith.constant 0 : i32
    return %c0_i32, %c0_i32_0 : i32, i32
  }
  func.func @transform_3(%arg0: i32) -> (i32, i32) {
    %c0_i32 = arith.constant 0 : i32
    %c0_i32_0 = arith.constant 0 : i32
    %c0_i32_1 = arith.constant 0 : i32
    return %c0_i32, %c0_i32_0 : i32, i32
  }
  func.func @transform_4(%arg0: i32) -> (i32, i32) {
    %c0_i32 = arith.constant 0 : i32
    %c0_i32_0 = arith.constant 0 : i32
    %c0_i32_1 = arith.constant 0 : i32
    return %c0_i32, %c0_i32_0 : i32, i32
  }
  func.func @transform_5(%arg0: i32) -> (i32, i32) {
    %c0_i32 = arith.constant 0 : i32
    %c0_i32_0 = arith.constant 0 : i32
    return %arg0, %c0_i32 : i32, i32
  }
}

</mosaic_0001>

<bundles_post_ra>
// kernel: tpu_custom_call.1
= control target key start
LH: loop header
LB: loop body
LE: loop exit
PB: predicated region body
PF: predicated region fallthrough
CT: control target
= control target key end

     0   :  { %vm30_vm0 = vcmask 261120   ;;  %s276_s0 = inlined_call_operand.vmem [shape: f32[8,32], index: 0, kind: input, shape index: {}]   ;;  %s277_s1 = inlined_call_operand.vmem [shape: f32[32,128], index: 1, kind: input, shape index: {}]   ;;  %s278_s2 = inlined_call_operand.vmem [shape: f32[1,128], index: 2, kind: input, shape index: {}]   ;;  %s279_s3 = inlined_call_operand.vmem [shape: f32[128,32], index: 3, kind: input, shape index: {}]   ;;  %s280_s4 = inlined_call_operand.vmem [shape: f32[1,32], index: 4, kind: input, shape index: {}]   ;;  %s281_s5 = inlined_call_operand.hbm [shape: f32[8,32], index: 5, kind: output, shape index: {}]  }
   0x1   :  { %v25_v0 = vld [vmem:[%s277_s1 + $0x18] sm:$0xff]  ;;  %v24_v1 = vld [vmem:[%s277_s1 + $0x10] sm:$0xff]  ;;  %v23_v3 = vld [vmem:[%s277_s1 + $0x8] sm:$0xff] }
   0x2   :  { %46 = vmatpush.msra.mxu0 %v25_v0  ;;  %v70_v2 = vld [vmem:[%s279_s3 + $0x78] sm:$0xff]  ;;  %v69_v4 = vld [vmem:[%s279_s3 + $0x70] sm:$0xff]  ;;  %v68_v5 = vld [vmem:[%s279_s3 + $0x68] sm:$0xff] }
   0x3   :  { %75 = vmatpush.msra.mxu1 %v70_v2  ;;  %v22_v6 = vld [vmem:[%s277_s1] sm:$0xff]  ;;  %v66_v9 = vld [vmem:[%s279_s3 + $0x58] sm:$0xff] }
   0x4   :  { %47 = vmatpush.msra.mxu0 %v24_v1  ;;  %v222_v7 = vld [vmem:[%s276_s0] sm:$0xff] }
   0x5   :  { %76 = vmatpush.msra.mxu1 %v69_v4  ;;  %v67_v8 = vld [vmem:[%s279_s3 + $0x60] sm:$0xff] }
   0x6   :  { %48 = vmatpush.msra.mxu0 %v23_v3 }
   0x7   :  { %77 = vmatpush.msra.mxu1 %v68_v5 }
   0x8   :  { %49 = vmatpush.msra.mxu0 %v22_v6 }
   0x9   :  { %10 = vsyncpa [#allocation3], 0  ;;  %132 = vmatmul.msk.f32.vlgmr.msra.gmra.mxu0 %vm30_vm0, %v222_v7  ;;  %78 = vmatpush.msra.mxu1 %v67_v8  ;;  %v65_v10 = vld [vmem:[%s279_s3 + $0x50] sm:$0xff]  ;;  %v64_v11 = vld [vmem:[%s279_s3 + $0x48] sm:$0xff]  ;;  %s123_s1 = sshll.u32 %s281_s5, 4  ;;  %s124_s1 = int_to_ptr.hbm [resolvable:$true] %s123_s1 }
   0xa   :  { %v63_v12 = vld [vmem:[%s279_s3 + $0x40] sm:$0xff]  ;;  %v62_v13 = vld [vmem:[%s279_s3 + $0x38] sm:$0xff]  ;;  %v61_v14 = vld [vmem:[%s279_s3 + $0x30] sm:$0xff] }
   0xb   :  { %79 = vmatpush.msra.mxu1 %v66_v9  ;;  %v60_v15 = vld [vmem:[%s279_s3 + $0x28] sm:$0xff]  ;;  %v59_v16 = vld [vmem:[%s279_s3 + $0x20] sm:$0xff]  ;;  %v58_v17 = vld [vmem:[%s279_s3 + $0x18] sm:$0xff] }
   0xc   :  { %v57_v18 = vld [vmem:[%s279_s3 + $0x10] sm:$0xff]  ;;  %v56_v19 = vld [vmem:[%s279_s3 + $0x8] sm:$0xff]  ;;  %v55_v20 = vld [vmem:[%s279_s3] sm:$0xff] }
   0xd   :  { %80 = vmatpush.msra.mxu1 %v65_v10  ;;  %v135_v21 = vld [vmem:[%s278_s2] ss:$0 sm:$0xff]  ;;  %s167_s2 = smov [#allocation2]  }
   0xe   :  { %v136_v25 = vld [vmem:[%s280_s4] ss:$0 sm:$0xff]  ;;  %s121_s3 = sshll.u32 %s167_s2, 4  ;;  %s122_s3 = int_to_ptr.vmem [resolvable:$true] %s121_s3 }
   0xf   :  { %81 = vmatpush.msra.mxu1 %v64_v11 }
  0x11   :  { %82 = vmatpush.msra.mxu1 %v63_v12 }
  0x13   :  { %83 = vmatpush.msra.mxu1 %v62_v13 }
  0x15   :  { %84 = vmatpush.msra.mxu1 %v61_v14 }
  0x17   :  { %85 = vmatpush.msra.mxu1 %v60_v15 }
  0x19   :  { %86 = vmatpush.msra.mxu1 %v59_v16 }
  0x1b   :  { %87 = vmatpush.msra.mxu1 %v58_v17 }
  0x1d   :  { %88 = vmatpush.msra.mxu1 %v57_v18 }
  0x1f   :  { %89 = vmatpush.msra.mxu1 %v56_v19 }
  0x21   :  { %90 = vmatpush.msra.mxu1 %v55_v20 }
  0x86   :  { %v51_v22 = vpop.f32.mrf.mxu0 }
  0x87   :  { %v52_v23 = vadd.f32 %v135_v21, %v51_v22 }
  0x89   :  { %v54_v24 = vmax.f32 %v52_v23, 0.0 }
  0x8b   :  { %91 = vmatmul.f32.vlgmr.msra.gmra.mxu1 %v54_v24 }
 0x108   :  { %v92_v26 = vpop.f32.mrf.mxu1 }
 0x109   :  { %v93_v27 = vadd.f32 %v136_v25, %v92_v26 }
 0x10b   :  { %v133_v28 = vmul.f32 -1.442695, %v93_v27 }
 0x10d   :  { %137 = vpow2.f32 %v133_v28 }
 0x113   :  { %v138_v29 = vpop.eup %137 }
 0x114   :  { %v98_v30 = vadd.f32 1.0, %v138_v29 }
 0x116   :  { %139 = vrcp.f32 %v98_v30  ;;  %v110_v34 = vand.u32 2147483648, %v98_v30  ;;  %v108_v36 = vand.u32 2147483647, %v98_v30  ;;  %vm104_vm2 = vweird.f32 %v98_v30 }
 0x118   :  { %v111_v38 = vor.u32 1.1754944e-38, %v110_v34  ;;  %vm109_vm4 = vcmp.eq.f32.partialorder %v108_v36, 8.507059e+37 }
 0x11c   :  { %v140_v31 = vpop.eup %139 }
 0x11d   :  { %v100_v32 = vmul.f32 %v140_v31, %v98_v30  ;;  %vm105_vm1 = vweird.f32 %v140_v31 }
 0x11e   :  { %vm106_vm3 = vmor %vm104_vm2, %vm105_vm1 }
 0x11f   :  { %v101_v33 = vsub.f32 1.0, %v100_v32 }
 0x121   :  { %v102_v35 = vmul.f32 %v140_v31, %v101_v33 }
 0x123   :  { %v103_v37 = vadd.f32 %v140_v31, %v102_v35 }
 0x125   :  { %v107_v39 = vsel %vm106_vm3, %v140_v31, %v103_v37 }
 0x126   :  { %v112_v40 = vsel %vm109_vm4, %v111_v38, %v107_v39 }
 0x127   :  { %v114_v41 = vmul.f32 %v112_v40, %v222_v7 }
 0x129   :  { %115 = vst.msk [vmem:[#allocation2] sm:$0xff] %vm30_vm0, %v114_v41 }
 0x12a   :  { %126 = dma.vmem_to_hbm [thread:$0]  %s122_s3, 128, %s124_s1, [#allocation3]  }
 0x12b   :  { %165 = dma.done.wait [#allocation3], 128  }
 0x12c   :  { %166 = vsyncadd [#allocation3], 4294967168 }
 0x12d   :  { %131 = vsyncpa [#allocation3], 1 }

</bundles_post_ra>
